<compile_context>
chip_gen: v7x
topology: tpu7x:2x2x1
jax: 0.10.0
libtpu: 0.0.40
codegen_flags: <defaults>
</compile_context>

<pallas_src>
import jax
import jax.numpy as jnp
from jax.experimental import pallas as pl
from jax.experimental.pallas import tpu as pltpu

_LANE = 128
_SUBLANE = 8
_HW_TILE_CAP = 2048                    # lanes per HW tile when HW is tiled
_TILE_BYTES_TARGET = 4 * 1024 * 1024   # ~4 MiB x tile -> 2 in + 2 out ~ 16 MiB
_VMEM_LIMIT = 32 * 1024 * 1024         # safe scoped-VMEM budget on v5e/v6e/v7x


# ----------------------------------------------------------------------------
# Kernels
# ----------------------------------------------------------------------------

def _make_pool_kernel(hw, hw_tile):
    """Lane-dense partial-sum pool: acc (rt, 128) += folded x tile (rt, ht)."""
    need_mask = (hw % hw_tile) != 0   # only when HW is tiled with a remainder

    def kernel(x_ref, acc_ref):
        k = pl.program_id(1)

        @pl.when(k == 0)
        def _():
            acc_ref[...] = jnp.zeros_like(acc_ref)

        x = x_ref[...].astype(jnp.float32)                       # (rt, ht)
        if need_mask:
            lane = jax.lax.broadcasted_iota(jnp.int32, x.shape, 1)
            x = jnp.where(k * hw_tile + lane < hw, x, jnp.float32(0.0))

        acc = acc_ref[...]                                       # (rt, 128)
        ht = x.shape[1]
        nfull = ht // _LANE
        rem = ht % _LANE
        for c in range(nfull):                                   # pure VPU adds
            acc = acc + x[:, c * _LANE:(c + 1) * _LANE]
        if rem:                                                  # full-HW escape-hatch tiles only
            tail = jnp.sum(x[:, nfull * _LANE:], axis=-1, keepdims=True)   # (rt, 1)
            lane0 = jax.lax.broadcasted_iota(jnp.int32, acc.shape, 1)
            acc = acc + jnp.where(lane0 == 0, tail, jnp.float32(0.0))
        acc_ref[...] = acc

    return kernel


def _scale_kernel(x_ref, g_ref, o_ref):
    """out = x * gate (per-row broadcast); product in f32, cast once on store."""
    x = x_ref[...].astype(jnp.float32)       # (rt, ht)
    o_ref[...] = (x * g_ref[...]).astype(o_ref.dtype)


# ----------------------------------------------------------------------------
# Tiling helpers
# ----------------------------------------------------------------------------

def _round_up(n, m):
    return ((n + m - 1) // m) * m


def _choose_hw_tile(hw):
    # Full-dim escape hatch (no lane padding, no masking) for moderate HW;
    # otherwise 128-multiple tiles with the remainder masked in the pool pass.
    return hw if hw <= _HW_TILE_CAP else _HW_TILE_CAP


def _choose_rows_tile(rows, hw_tile, dtype_bytes):
    if rows <= _SUBLANE:
        return rows                                   # full-dim escape hatch
    target = max(1, _TILE_BYTES_TARGET // (hw_tile * dtype_bytes))
    rt = min(rows, target)
    rt = max(_SUBLANE, (rt // _SUBLANE) * _SUBLANE)   # multiple of 8, <= rows
    # v7x megacore: only "parallel" axes shard across the 2 TensorCores and the
    # pool pass's HW axis is "arbitrary" -> keep >= 2 row tiles when possible.
    if rows >= 2 * _SUBLANE:
        rt = min(rt, _round_up(pl.cdiv(rows, 2), _SUBLANE))
    return rt


# ----------------------------------------------------------------------------
# Wrapper
# ----------------------------------------------------------------------------

def se_layer(x_nchw, w1, w2):
    """x_nchw: (B, C, H, W); w1: (Cr, C); w2: (C, Cr). Returns (B, C, H, W)."""
    B, C, H, W = x_nchw.shape
    HW = H * W
    rows = B * C
    dtype_bytes = jnp.dtype(x_nchw.dtype).itemsize

    hw_tile = _choose_hw_tile(HW)
    rows_tile = _choose_rows_tile(rows, hw_tile, dtype_bytes)
    grid = (pl.cdiv(rows, rows_tile), pl.cdiv(HW, hw_tile))

    # Lane-dense (rows, HW) view; reshape is free (no padded HBM copies).
    x2 = x_nchw.reshape(rows, HW)

    # ---- Pass 1: global average pool as lane-dense partial sums -------------
    partial = pl.pallas_call(
        _make_pool_kernel(HW, hw_tile),
        out_shape=jax.ShapeDtypeStruct((rows, _LANE), jnp.float32),
        grid=grid,
        in_specs=[pl.BlockSpec((rows_tile, hw_tile), lambda r, k: (r, k))],
        out_specs=pl.BlockSpec((rows_tile, _LANE), lambda r, k: (r, 0)),
        compiler_params=pltpu.CompilerParams(
            dimension_semantics=("parallel", "arbitrary"),
            vmem_limit_bytes=_VMEM_LIMIT),
    )(x2)

    # ---- Excitation (tiny): plain JAX between the two streaming passes ------
    pooled = partial.sum(axis=-1).reshape(B, C) * jnp.float32(1.0 / HW)  # (B, C)
    h = jnp.maximum(pooled @ w1.astype(jnp.float32).T, 0.0)             # (B, Cr)
    gate = jax.nn.sigmoid(h @ w2.astype(jnp.float32).T)                 # (B, C) f32
    gate2 = gate.reshape(rows, 1)

    # ---- Pass 2: broadcast-scale x by the per-(b, c) gate -------------------
    out2 = pl.pallas_call(
        _scale_kernel,
        out_shape=jax.ShapeDtypeStruct((rows, HW), x_nchw.dtype),
        grid=grid,
        in_specs=[
            pl.BlockSpec((rows_tile, hw_tile), lambda r, k: (r, k)),
            pl.BlockSpec((rows_tile, 1), lambda r, k: (r, 0)),
        ],
        out_specs=pl.BlockSpec((rows_tile, hw_tile), lambda r, k: (r, k)),
        compiler_params=pltpu.CompilerParams(
            dimension_semantics=("parallel", "parallel"),
            vmem_limit_bytes=_VMEM_LIMIT),
    )(x2, gate2)

    return out2.reshape(B, C, H, W)


# ----------------------------------------------------------------------------
# Reference + demo
# ----------------------------------------------------------------------------

def _reference(x, w1, w2):
    y = jnp.mean(x, axis=(2, 3))                    # (B, C)
    y = jnp.maximum(y @ w1.T, 0.0)                  # (B, Cr)
    y = jax.nn.sigmoid(y @ w2.T)                    # (B, C)
    return x * y[:, :, None, None]


if __name__ == "__main__":
    key = jax.random.PRNGKey(0)
    k_x, k_w1, k_w2 = jax.random.split(key, 3)

    # Small shapes consistent with the module: channel=4 (< 16 => reduction=1).
    B, C, H, W = 2, 4, 16, 16
    reduction = 1 if C < 16 else 16
    Cr = C // reduction

    x = jax.random.normal(k_x, (B, C, H, W), dtype=jnp.float32)
    # Linear(..., bias=False) weight shapes: (out_features, in_features).
    w1 = jax.random.normal(k_w1, (Cr, C), dtype=jnp.float32) * (1.0 / jnp.sqrt(C))
    w2 = jax.random.normal(k_w2, (C, Cr), dtype=jnp.float32) * (1.0 / jnp.sqrt(Cr))

    out = se_layer(x, w1, w2)
    out = jax.block_until_ready(out)

    ref = _reference(x, w1, w2)
    assert jnp.allclose(out, ref, atol=1e-5, rtol=1e-5), "mismatch vs reference"

    print("KERNEL_OK")
</pallas_src>

<mosaic_0001>
module attributes {stable_mosaic.version = 11 : i64} {
  func.func @kernel(%arg0: i32, %arg1: i32, %arg2: memref<8x256xf32, #tpu.memory_space<vmem>>, %arg3: memref<8x128xf32, #tpu.memory_space<vmem>>) attributes {dimension_semantics = [#tpu.dimension_semantics<parallel>, #tpu.dimension_semantics<arbitrary>], iteration_bounds = array<i64: 1, 1>, scalar_prefetch = 0 : i64, scratch_operands = 0 : i64, tpu.core_type = #tpu.core_type<tc>, window_params = [{transform_indices = @transform_0, window_bounds = array<i64: 8, 256>}, {transform_indices = @transform_1, window_bounds = array<i64: 8, 128>}]} {
    %c0_i32 = arith.constant 0 : i32
    %0 = arith.cmpi eq, %arg1, %c0_i32 : i32
    %1 = arith.extui %0 : i1 to i32
    %c0_i32_0 = arith.constant 0 : i32
    %2 = arith.cmpi ne, %1, %c0_i32_0 : i32
    scf.if %2 {
      %cst = arith.constant 0.000000e+00 : f32
      %10 = vector.broadcast %cst : f32 to vector<8x128xf32>
      %c0_6 = arith.constant 0 : index
      %c0_7 = arith.constant 0 : index
      %11 = vector.load %arg3[%c0_6, %c0_7] : memref<8x128xf32, #tpu.memory_space<vmem>>, vector<8x128xf32>
      tpu.vector_store %arg3[%c0_6, %c0_7], %10 {strides = array<i32>} : memref<8x128xf32, #tpu.memory_space<vmem>>, vector<8x128xf32>,
    } else {
    }
    %c0 = arith.constant 0 : index
    %c0_1 = arith.constant 0 : index
    %3 = vector.load %arg2[%c0, %c0_1] : memref<8x256xf32, #tpu.memory_space<vmem>>, vector<8x256xf32>
    %c0_2 = arith.constant 0 : index
    %c0_3 = arith.constant 0 : index
    %4 = vector.load %arg3[%c0_2, %c0_3] : memref<8x128xf32, #tpu.memory_space<vmem>>, vector<8x128xf32>
    %5 = vector.extract_strided_slice %3 {offsets = [0, 0], sizes = [8, 128], strides = [1, 1]} : vector<8x256xf32> to vector<8x128xf32>
    %6 = arith.addf %4, %5 : vector<8x128xf32>
    %7 = vector.extract_strided_slice %3 {offsets = [0, 128], sizes = [8, 128], strides = [1, 1]} : vector<8x256xf32> to vector<8x128xf32>
    %8 = arith.addf %6, %7 : vector<8x128xf32>
    %c0_4 = arith.constant 0 : index
    %c0_5 = arith.constant 0 : index
    %9 = vector.load %arg3[%c0_4, %c0_5] : memref<8x128xf32, #tpu.memory_space<vmem>>, vector<8x128xf32>
    tpu.vector_store %arg3[%c0_4, %c0_5], %8 {strides = array<i32>} : memref<8x128xf32, #tpu.memory_space<vmem>>, vector<8x128xf32>,
    return
  }
  func.func @transform_0(%arg0: i32, %arg1: i32) -> (i32, i32) {
    %c0_i32 = arith.constant 0 : i32
    return %arg0, %arg1 : i32, i32
  }
  func.func @transform_1(%arg0: i32, %arg1: i32) -> (i32, i32) {
    %c0_i32 = arith.constant 0 : i32
    %c0_i32_0 = arith.constant 0 : i32
    return %arg0, %c0_i32 : i32, i32
  }
}

</mosaic_0001>

<bundles_post_ra>
// kernel: tpu_custom_call.1
= control target key start
LH: loop header
LB: loop body
LE: loop exit
PB: predicated region body
PF: predicated region fallthrough
CT: control target
= control target key end

     0   :  { %6 = vsyncpa [#allocation3], 0  ;;  %s134_s0 = inlined_call_operand.hbm [shape: f32[8,256], index: 0, kind: input, shape index: {}]   ;;  %s135_s1 = inlined_call_operand.hbm [shape: f32[8,128], index: 1, kind: output, shape index: {}]  }
   0x1   :  { %7 = vsyncpa [#allocation4], 0  ;;  %s98_s6 = smov [#allocation2]   ;;  %s50_s10 = scalar_lea.hbm %s134_s0, 256 }
   0x2   :  { %s14_s7 = sshll.u32 %s98_s6, 4  ;;  %p51_p0 = scmp.ne.s32.totalorder %s134_s0, %s50_s10  ;;  %s15_s7 = int_to_ptr.vmem [resolvable:$true] %s14_s7 }
   0x3   :  { %p54_p1 = scmp.lt.u32.totalorder %s50_s10, %s134_s0 }
   0x5   :  { %p56_p2 = pnand %p54_p1, %p51_p0 }
   0x7   :  { %59 = shalt.err (!%p56_p2)
}
   0x8   :  { %s60_s15 = scalar_lea.vmem %s15_s7, 256  ;;  %p65_p4 = scmp.lt.s32.totalorder %s15_s7, %s15_s7 }
   0x9   :  { %p61_p3 = scmp.ne.s32.totalorder %s15_s7, %s60_s15  ;;  %p66_p5 = scmp.lt.s32.totalorder %s60_s15, %s60_s15 }
   0xb   :  { %p67_p6 = por %p66_p5, %p65_p4 }
   0xd   :  { %p68_p7 = pnand %p67_p6, %p61_p3 }
   0xf   :  { %71 = shalt.err (!%p68_p7)
}
  0x10   :  { %17 = dma.hbm_to_vmem [thread:$0]  %s134_s0, 256, %s15_s7, [#allocation3]  }
  0x11   :  { %94 = dma.done.wait [#allocation3], 256  }
  0x12   :  { %95 = vsyncadd [#allocation3], 4294967040  ;;  %v26_v0 = vld [vmem:[#allocation2] sm:$0xff]  ;;  %v27_v1 = vld [vmem:[#allocation2 + $0x8] sm:$0xff]  ;;  %s99_s18 = smov [#allocation5]  }
  0x13   :  { %s38_s19 = sshll.u32 %s99_s18, 4  ;;  %v30_v2 = vadd.f32 %v27_v1, %v26_v0  ;;  %s39_s19 = int_to_ptr.vmem [resolvable:$true] %s38_s19 }
  0x14   :  { %s72_s20 = scalar_lea.vmem %s39_s19, 128  ;;  %p77_p9 = scmp.lt.s32.totalorder %s39_s19, %s39_s19 }
  0x15   :  { %31 = vst [vmem:[#allocation5] sm:$0xff] %v30_v2  ;;  %p73_p8 = scmp.ne.s32.totalorder %s39_s19, %s72_s20  ;;  %p78_p10 = scmp.lt.s32.totalorder %s72_s20, %s72_s20 }
  0x17   :  { %p79_p11 = por %p78_p10, %p77_p9 }
  0x19   :  { %p80_p12 = pnand %p79_p11, %p73_p8 }
  0x1b   :  { %83 = shalt.err (!%p80_p12)
}
  0x1c   :  { %s84_s0 = scalar_lea.hbm %s135_s1, 128 }
  0x1d   :  { %p85_p13 = scmp.ne.s32.totalorder %s135_s1, %s84_s0  ;;  %p88_p0 = scmp.lt.u32.totalorder %s84_s0, %s135_s1 }
  0x1f   :  { %p90_p1 = pnand %p88_p0, %p85_p13 }
  0x21   :  { %93 = shalt.err (!%p90_p1)
}
  0x22   :  { %41 = dma.vmem_to_hbm [thread:$0]  %s39_s19, 128, %s135_s1, [#allocation4]  }
  0x23   :  { %96 = dma.done.wait [#allocation4], 128  }
  0x24   :  { %97 = vsyncadd [#allocation4], 4294967168 }
  0x25   :  { %45 = vsyncpa [#allocation3], 1 }
  0x26   :  { %46 = vsyncpa [#allocation4], 1 }

</bundles_post_ra>
